<compile_context>
chip_gen: v7x
topology: tpu7x:2x2x1
jax: 0.10.0
libtpu: 0.0.40
codegen_flags: <defaults>
</compile_context>

<pallas_src>
import functools

import numpy as np
import jax
import jax.numpy as jnp
from jax.experimental import pallas as pl
from jax.experimental.pallas import tpu as pltpu


def _conv_out(n):
    # output spatial extent of a 3x3, stride-2, pad-1 conv
    return (n + 2 - 3) // 2 + 1


# ----------------------------- Pallas kernel --------------------------------
def _backbone_kernel(x_ref,
                     r1_ref, b1_ref, c1_ref,
                     r2_ref, b2_ref, c2_ref,
                     r3_ref, b3_ref, c3_ref,
                     o_ref):
    """Whole batch, 3 fused conv+bias+ReLU stages; intermediates stay on-chip.

    Data layout everywhere: rows = (batch, height), lanes = (width, channels).
    """

    def stage(x_bf16, r_ref, b_ref, bias_ref):
        acc = None
        for dy in range(3):  # static unroll: 3 (row-gather, weight) MXU matmul pairs
            rows = jnp.dot(r_ref[dy], x_bf16,
                           preferred_element_type=jnp.float32)
            rows = rows.astype(jnp.bfloat16)      # exact: R is a 0/1 selection
            part = jnp.dot(rows, b_ref[dy],
                           preferred_element_type=jnp.float32)
            acc = part if acc is None else acc + part
        # bias + ReLU stay in f32 on the VPU (v5e has no bf16 VPU path)
        return jnp.maximum(acc + bias_ref[...], 0.0)

    x = x_ref[...]                                                 # [N*H, W*Cin] bf16
    y1 = stage(x,  r1_ref, b1_ref, c1_ref).astype(jnp.bfloat16)    # p3 (on-chip only)
    y2 = stage(y1, r2_ref, b2_ref, c2_ref).astype(jnp.bfloat16)    # p4 (on-chip only)
    y3 = stage(y2, r3_ref, b3_ref, c3_ref)                         # p5, f32
    o_ref[...] = y3                                                # [N*Ho3, Wo3*C3]


def _fused_backbone_call(x2d, operands):
    (r1, b1, c1), (r2, b2, c2), (r3, b3, c3) = operands
    m_out = r3.shape[1]          # N * Ho3
    n_out = b3.shape[2]          # Wo3 * C3

    def full(a):
        return pl.BlockSpec(a.shape, lambda i, _nd=a.ndim: (0,) * _nd)

    return pl.pallas_call(
        _backbone_kernel,
        out_shape=jax.ShapeDtypeStruct((m_out, n_out), jnp.float32),
        grid=(1,),                         # single step: everything resident in VMEM
        in_specs=[full(x2d),
                  full(r1), full(b1), full(c1),
                  full(r2), full(b2), full(c2),
                  full(r3), full(b3), full(c3)],
        out_specs=pl.BlockSpec((m_out, n_out), lambda i: (0, 0)),
        compiler_params=pltpu.CompilerParams(
            dimension_semantics=("arbitrary",)),
    )(x2d, r1, b1, c1, r2, b2, c2, r3, b3, c3)


# ------------------------------- setup / glue ---------------------------------
def init_backbone_params(key, cin=4, widths=(8, 16, 32)):
    params = []
    c_prev = cin
    for c_out in widths:
        key, kw_, kb_ = jax.random.split(key, 3)
        fan_in = 3 * 3 * c_prev
        w = jax.random.normal(kw_, (3, 3, c_prev, c_out), jnp.float32)
        w = w * (2.0 / fan_in) ** 0.5
        b = 0.01 * jax.random.normal(kb_, (c_out,), jnp.float32)
        params.append((w, b))
        c_prev = c_out
    return params


def pack_operands(params, n, h, w):
    """Build, per stage:
      R  [3, N*Ho, N*Hi]   : 0/1 stride-2 row-selection (pad=1 rows give all-zero rows)
      B  [3, Wi*Ci, Wo*Co] : W-tap/stride gather folded together with the conv weights
      bias [1, Wo*Co]      : per-channel bias tiled across output columns
    All matmul operands are bf16; bias stays f32."""
    ops = []
    hi, wi = h, w
    for (wt, b) in params:
        kh, kw, cin, cout = wt.shape
        ho, wo = _conv_out(hi), _conv_out(wi)
        wt_np = np.asarray(wt, np.float32)
        b_np = np.asarray(b, np.float32)

        r = np.zeros((3, n * ho, n * hi), np.float32)
        for dy in range(3):
            for bi in range(n):
                for i in range(ho):
                    src = 2 * i + dy - 1
                    if 0 <= src < hi:
                        r[dy, bi * ho + i, bi * hi + src] = 1.0

        bm = np.zeros((3, wi * cin, wo * cout), np.float32)
        for dy in range(3):
            for dx in range(3):
                for j in range(wo):
                    src = 2 * j + dx - 1
                    if 0 <= src < wi:
                        bm[dy, src * cin:(src + 1) * cin,
                           j * cout:(j + 1) * cout] = wt_np[dy, dx]

        bias_lane = np.tile(b_np, wo)[None, :]            # [1, Wo*Co]
        ops.append((jnp.asarray(r, jnp.bfloat16),
                    jnp.asarray(bm, jnp.bfloat16),
                    jnp.asarray(bias_lane, jnp.float32)))
        hi, wi = ho, wo
    return tuple(ops)


@functools.partial(jax.jit, static_argnums=(2,))
def backbone_wrapper_forward(x_nchw, operands, out_dims):
    """Runs the synthesized backbone and returns only the last feature map (p5),
    matching BackboneWrapper.forward.  Input/output are NCHW float32."""
    n, cin, h, w = x_nchw.shape
    ho, wo, cout = out_dims

    # NCHW -> rows=(n,h), lanes=(w,c); batch folded into the matmul M dimension.
    x = jnp.transpose(x_nchw, (0, 2, 3, 1)).reshape(n * h, w * cin)
    x = x.astype(jnp.bfloat16)

    out = _fused_backbone_call(x, operands)               # [N*Ho3, Wo3*C3] f32
    p5 = out.reshape(n, ho, wo, cout)
    return jnp.transpose(p5, (0, 3, 1, 2))                # NHWC -> NCHW


def reference_forward(x_nchw, params):
    """Pure-JAX reference (same bf16 operand rounding) for correctness checking."""
    x = jnp.transpose(x_nchw, (0, 2, 3, 1))
    for (wt, b) in params:
        xb = x.astype(jnp.bfloat16).astype(jnp.float32)
        wb = wt.astype(jnp.bfloat16).astype(jnp.float32)
        x = jax.lax.conv_general_dilated(
            xb, wb, window_strides=(2, 2), padding=((1, 1), (1, 1)),
            dimension_numbers=("NHWC", "HWIO", "NHWC"),
            precision=jax.lax.Precision.HIGHEST)
        x = jnp.maximum(x + b, 0.0)
    return jnp.transpose(x, (0, 3, 1, 2))


# ------------------------------------ main ------------------------------------
if __name__ == "__main__":
    key = jax.random.PRNGKey(0)
    kx, kp = jax.random.split(key)

    # Input matching the PyTorch NCHW convention: batch=2, channels=4, 16x16 spatial.
    N, CIN, H, W = 2, 4, 16, 16
    widths = (8, 16, 32)

    x = jax.random.normal(kx, (N, CIN, H, W), jnp.float32)
    params = init_backbone_params(kp, cin=CIN, widths=widths)
    operands = pack_operands(params, n=N, h=H, w=W)

    ho = _conv_out(_conv_out(_conv_out(H)))
    wo = _conv_out(_conv_out(_conv_out(W)))
    cout_last = widths[-1]

    p5_out = backbone_wrapper_forward(x, operands, (ho, wo, cout_last))
    jax.block_until_ready(p5_out)

    assert p5_out.shape == (N, cout_last, ho, wo), p5_out.shape
    assert p5_out.dtype == jnp.float32

    ref = reference_forward(x, params)
    np.testing.assert_allclose(np.asarray(p5_out), np.asarray(ref),
                               atol=5e-3, rtol=5e-3)

    print("KERNEL_OK")
</pallas_src>

<mosaic_0001>
module attributes {stable_mosaic.version = 11 : i64} {
  func.func @_backbone_kernel(%arg0: i32, %arg1: memref<32x64xbf16, #tpu.memory_space<vmem>>, %arg2: memref<3x16x32xbf16, #tpu.memory_space<vmem>>, %arg3: memref<3x64x64xbf16, #tpu.memory_space<vmem>>, %arg4: memref<1x64xf32, #tpu.memory_space<vmem>>, %arg5: memref<3x8x16xbf16, #tpu.memory_space<vmem>>, %arg6: memref<3x64x64xbf16, #tpu.memory_space<vmem>>, %arg7: memref<1x64xf32, #tpu.memory_space<vmem>>, %arg8: memref<3x4x8xbf16, #tpu.memory_space<vmem>>, %arg9: memref<3x64x64xbf16, #tpu.memory_space<vmem>>, %arg10: memref<1x64xf32, #tpu.memory_space<vmem>>, %arg11: memref<4x64xf32, #tpu.memory_space<vmem>>) attributes {dimension_semantics = [#tpu.dimension_semantics<arbitrary>], iteration_bounds = array<i64: 1>, scalar_prefetch = 0 : i64, scratch_operands = 0 : i64, tpu.core_type = #tpu.core_type<tc>, window_params = [{pipeline_mode = #tpu.pipeline_mode<synchronous>, transform_indices = @transform_0, window_bounds = array<i64: 32, 64>}, {pipeline_mode = #tpu.pipeline_mode<synchronous>, transform_indices = @transform_1, window_bounds = array<i64: 3, 16, 32>}, {pipeline_mode = #tpu.pipeline_mode<synchronous>, transform_indices = @transform_2, window_bounds = array<i64: 3, 64, 64>}, {pipeline_mode = #tpu.pipeline_mode<synchronous>, transform_indices = @transform_3, window_bounds = array<i64: 1, 64>}, {pipeline_mode = #tpu.pipeline_mode<synchronous>, transform_indices = @transform_4, window_bounds = array<i64: 3, 8, 16>}, {pipeline_mode = #tpu.pipeline_mode<synchronous>, transform_indices = @transform_5, window_bounds = array<i64: 3, 64, 64>}, {pipeline_mode = #tpu.pipeline_mode<synchronous>, transform_indices = @transform_6, window_bounds = array<i64: 1, 64>}, {pipeline_mode = #tpu.pipeline_mode<synchronous>, transform_indices = @transform_7, window_bounds = array<i64: 3, 4, 8>}, {pipeline_mode = #tpu.pipeline_mode<synchronous>, transform_indices = @transform_8, window_bounds = array<i64: 3, 64, 64>}, {pipeline_mode = #tpu.pipeline_mode<synchronous>, transform_indices = @transform_9, window_bounds = array<i64: 1, 64>}, {pipeline_mode = #tpu.pipeline_mode<synchronous>, transform_indices = @transform_10, window_bounds = array<i64: 4, 64>}]} {
    %c0 = arith.constant 0 : index
    %c0_0 = arith.constant 0 : index
    %0 = vector.load %arg1[%c0, %c0_0] : memref<32x64xbf16, #tpu.memory_space<vmem>>, vector<32x64xbf16>
    %c0_1 = arith.constant 0 : index
    %c0_2 = arith.constant 0 : index
    %c0_3 = arith.constant 0 : index
    %1 = vector.load %arg2[%c0_1, %c0_2, %c0_3] : memref<3x16x32xbf16, #tpu.memory_space<vmem>>, vector<1x16x32xbf16>
    %2 = vector.shape_cast %1 : vector<1x16x32xbf16> to vector<16x32xbf16>
    %cst = arith.constant dense<0.000000e+00> : vector<16x64xf32>
    %3 = tpu.matmul %2, %0, %cst {dimension_numbers = #tpu.dot_dimension_numbers<[1], [0], [0], [1], [0, 0, 1, 1], [], []>} : vector<16x32xbf16>, vector<32x64xbf16>, vector<16x64xf32> -> vector<16x64xf32>
    %4 = arith.truncf %3 : vector<16x64xf32> to vector<16x64xbf16>
    %c0_4 = arith.constant 0 : index
    %c0_5 = arith.constant 0 : index
    %c0_6 = arith.constant 0 : index
    %5 = vector.load %arg3[%c0_4, %c0_5, %c0_6] : memref<3x64x64xbf16, #tpu.memory_space<vmem>>, vector<1x64x64xbf16>
    %6 = vector.shape_cast %5 : vector<1x64x64xbf16> to vector<64x64xbf16>
    %cst_7 = arith.constant dense<0.000000e+00> : vector<16x64xf32>
    %7 = tpu.matmul %4, %6, %cst_7 {dimension_numbers = #tpu.dot_dimension_numbers<[1], [0], [0], [1], [0, 0, 1, 1], [], []>} : vector<16x64xbf16>, vector<64x64xbf16>, vector<16x64xf32> -> vector<16x64xf32>
    %c1 = arith.constant 1 : index
    %c0_8 = arith.constant 0 : index
    %c0_9 = arith.constant 0 : index
    %8 = vector.load %arg2[%c1, %c0_8, %c0_9] : memref<3x16x32xbf16, #tpu.memory_space<vmem>>, vector<1x16x32xbf16>
    %9 = vector.shape_cast %8 : vector<1x16x32xbf16> to vector<16x32xbf16>
    %cst_10 = arith.constant dense<0.000000e+00> : vector<16x64xf32>
    %10 = tpu.matmul %9, %0, %cst_10 {dimension_numbers = #tpu.dot_dimension_numbers<[1], [0], [0], [1], [0, 0, 1, 1], [], []>} : vector<16x32xbf16>, vector<32x64xbf16>, vector<16x64xf32> -> vector<16x64xf32>
    %11 = arith.truncf %10 : vector<16x64xf32> to vector<16x64xbf16>
    %c1_11 = arith.constant 1 : index
    %c0_12 = arith.constant 0 : index
    %c0_13 = arith.constant 0 : index
    %12 = vector.load %arg3[%c1_11, %c0_12, %c0_13] : memref<3x64x64xbf16, #tpu.memory_space<vmem>>, vector<1x64x64xbf16>
    %13 = vector.shape_cast %12 : vector<1x64x64xbf16> to vector<64x64xbf16>
    %cst_14 = arith.constant dense<0.000000e+00> : vector<16x64xf32>
    %14 = tpu.matmul %11, %13, %cst_14 {dimension_numbers = #tpu.dot_dimension_numbers<[1], [0], [0], [1], [0, 0, 1, 1], [], []>} : vector<16x64xbf16>, vector<64x64xbf16>, vector<16x64xf32> -> vector<16x64xf32>
    %15 = arith.addf %7, %14 : vector<16x64xf32>
    %c2 = arith.constant 2 : index
    %c0_15 = arith.constant 0 : index
    %c0_16 = arith.constant 0 : index
    %16 = vector.load %arg2[%c2, %c0_15, %c0_16] : memref<3x16x32xbf16, #tpu.memory_space<vmem>>, vector<1x16x32xbf16>
    %17 = vector.shape_cast %16 : vector<1x16x32xbf16> to vector<16x32xbf16>
    %cst_17 = arith.constant dense<0.000000e+00> : vector<16x64xf32>
    %18 = tpu.matmul %17, %0, %cst_17 {dimension_numbers = #tpu.dot_dimension_numbers<[1], [0], [0], [1], [0, 0, 1, 1], [], []>} : vector<16x32xbf16>, vector<32x64xbf16>, vector<16x64xf32> -> vector<16x64xf32>
    %19 = arith.truncf %18 : vector<16x64xf32> to vector<16x64xbf16>
    %c2_18 = arith.constant 2 : index
    %c0_19 = arith.constant 0 : index
    %c0_20 = arith.constant 0 : index
    %20 = vector.load %arg3[%c2_18, %c0_19, %c0_20] : memref<3x64x64xbf16, #tpu.memory_space<vmem>>, vector<1x64x64xbf16>
    %21 = vector.shape_cast %20 : vector<1x64x64xbf16> to vector<64x64xbf16>
    %cst_21 = arith.constant dense<0.000000e+00> : vector<16x64xf32>
    %22 = tpu.matmul %19, %21, %cst_21 {dimension_numbers = #tpu.dot_dimension_numbers<[1], [0], [0], [1], [0, 0, 1, 1], [], []>} : vector<16x64xbf16>, vector<64x64xbf16>, vector<16x64xf32> -> vector<16x64xf32>
    %23 = arith.addf %15, %22 : vector<16x64xf32>
    %c0_22 = arith.constant 0 : index
    %c0_23 = arith.constant 0 : index
    %24 = vector.load %arg4[%c0_22, %c0_23] : memref<1x64xf32, #tpu.memory_space<vmem>>, vector<1x64xf32>
    %25 = vector.broadcast %24 : vector<1x64xf32> to vector<16x64xf32>
    %26 = arith.addf %23, %25 : vector<16x64xf32>
    %cst_24 = arith.constant 0.000000e+00 : f32
    %27 = vector.broadcast %cst_24 : f32 to vector<16x64xf32>
    %28 = arith.maximumf %26, %27 : vector<16x64xf32>
    %29 = arith.truncf %28 : vector<16x64xf32> to vector<16x64xbf16>
    %c0_25 = arith.constant 0 : index
    %c0_26 = arith.constant 0 : index
    %c0_27 = arith.constant 0 : index
    %30 = vector.load %arg5[%c0_25, %c0_26, %c0_27] : memref<3x8x16xbf16, #tpu.memory_space<vmem>>, vector<1x8x16xbf16>
    %31 = vector.shape_cast %30 : vector<1x8x16xbf16> to vector<8x16xbf16>
    %cst_28 = arith.constant dense<0.000000e+00> : vector<8x64xf32>
    %32 = tpu.matmul %31, %29, %cst_28 {dimension_numbers = #tpu.dot_dimension_numbers<[1], [0], [0], [1], [0, 0, 1, 1], [], []>} : vector<8x16xbf16>, vector<16x64xbf16>, vector<8x64xf32> -> vector<8x64xf32>
    %33 = arith.truncf %32 : vector<8x64xf32> to vector<8x64xbf16>
    %c0_29 = arith.constant 0 : index
    %c0_30 = arith.constant 0 : index
    %c0_31 = arith.constant 0 : index
    %34 = vector.load %arg6[%c0_29, %c0_30, %c0_31] : memref<3x64x64xbf16, #tpu.memory_space<vmem>>, vector<1x64x64xbf16>
    %35 = vector.shape_cast %34 : vector<1x64x64xbf16> to vector<64x64xbf16>
    %cst_32 = arith.constant dense<0.000000e+00> : vector<8x64xf32>
    %36 = tpu.matmul %33, %35, %cst_32 {dimension_numbers = #tpu.dot_dimension_numbers<[1], [0], [0], [1], [0, 0, 1, 1], [], []>} : vector<8x64xbf16>, vector<64x64xbf16>, vector<8x64xf32> -> vector<8x64xf32>
    %c1_33 = arith.constant 1 : index
    %c0_34 = arith.constant 0 : index
    %c0_35 = arith.constant 0 : index
    %37 = vector.load %arg5[%c1_33, %c0_34, %c0_35] : memref<3x8x16xbf16, #tpu.memory_space<vmem>>, vector<1x8x16xbf16>
    %38 = vector.shape_cast %37 : vector<1x8x16xbf16> to vector<8x16xbf16>
    %cst_36 = arith.constant dense<0.000000e+00> : vector<8x64xf32>
    %39 = tpu.matmul %38, %29, %cst_36 {dimension_numbers = #tpu.dot_dimension_numbers<[1], [0], [0], [1], [0, 0, 1, 1], [], []>} : vector<8x16xbf16>, vector<16x64xbf16>, vector<8x64xf32> -> vector<8x64xf32>
    %40 = arith.truncf %39 : vector<8x64xf32> to vector<8x64xbf16>
    %c1_37 = arith.constant 1 : index
    %c0_38 = arith.constant 0 : index
    %c0_39 = arith.constant 0 : index
    %41 = vector.load %arg6[%c1_37, %c0_38, %c0_39] : memref<3x64x64xbf16, #tpu.memory_space<vmem>>, vector<1x64x64xbf16>
    %42 = vector.shape_cast %41 : vector<1x64x64xbf16> to vector<64x64xbf16>
    %cst_40 = arith.constant dense<0.000000e+00> : vector<8x64xf32>
    %43 = tpu.matmul %40, %42, %cst_40 {dimension_numbers = #tpu.dot_dimension_numbers<[1], [0], [0], [1], [0, 0, 1, 1], [], []>} : vector<8x64xbf16>, vector<64x64xbf16>, vector<8x64xf32> -> vector<8x64xf32>
    %44 = arith.addf %36, %43 : vector<8x64xf32>
    %c2_41 = arith.constant 2 : index
    %c0_42 = arith.constant 0 : index
    %c0_43 = arith.constant 0 : index
    %45 = vector.load %arg5[%c2_41, %c0_42, %c0_43] : memref<3x8x16xbf16, #tpu.memory_space<vmem>>, vector<1x8x16xbf16>
    %46 = vector.shape_cast %45 : vector<1x8x16xbf16> to vector<8x16xbf16>
    %cst_44 = arith.constant dense<0.000000e+00> : vector<8x64xf32>
    %47 = tpu.matmul %46, %29, %cst_44 {dimension_numbers = #tpu.dot_dimension_numbers<[1], [0], [0], [1], [0, 0, 1, 1], [], []>} : vector<8x16xbf16>, vector<16x64xbf16>, vector<8x64xf32> -> vector<8x64xf32>
    %48 = arith.truncf %47 : vector<8x64xf32> to vector<8x64xbf16>
    %c2_45 = arith.constant 2 : index
    %c0_46 = arith.constant 0 : index
    %c0_47 = arith.constant 0 : index
    %49 = vector.load %arg6[%c2_45, %c0_46, %c0_47] : memref<3x64x64xbf16, #tpu.memory_space<vmem>>, vector<1x64x64xbf16>
    %50 = vector.shape_cast %49 : vector<1x64x64xbf16> to vector<64x64xbf16>
    %cst_48 = arith.constant dense<0.000000e+00> : vector<8x64xf32>
    %51 = tpu.matmul %48, %50, %cst_48 {dimension_numbers = #tpu.dot_dimension_numbers<[1], [0], [0], [1], [0, 0, 1, 1], [], []>} : vector<8x64xbf16>, vector<64x64xbf16>, vector<8x64xf32> -> vector<8x64xf32>
    %52 = arith.addf %44, %51 : vector<8x64xf32>
    %c0_49 = arith.constant 0 : index
    %c0_50 = arith.constant 0 : index
    %53 = vector.load %arg7[%c0_49, %c0_50] : memref<1x64xf32, #tpu.memory_space<vmem>>, vector<1x64xf32>
    %54 = vector.broadcast %53 : vector<1x64xf32> to vector<8x64xf32>
    %55 = arith.addf %52, %54 : vector<8x64xf32>
    %cst_51 = arith.constant 0.000000e+00 : f32
    %56 = vector.broadcast %cst_51 : f32 to vector<8x64xf32>
    %57 = arith.maximumf %55, %56 : vector<8x64xf32>
    %58 = arith.truncf %57 : vector<8x64xf32> to vector<8x64xbf16>
    %c0_52 = arith.constant 0 : index
    %c0_53 = arith.constant 0 : index
    %c0_54 = arith.constant 0 : index
    %59 = vector.load %arg8[%c0_52, %c0_53, %c0_54] : memref<3x4x8xbf16, #tpu.memory_space<vmem>>, vector<1x4x8xbf16>
    %60 = vector.shape_cast %59 : vector<1x4x8xbf16> to vector<4x8xbf16>
    %cst_55 = arith.constant dense<0.000000e+00> : vector<4x64xf32>
    %61 = tpu.matmul %60, %58, %cst_55 {dimension_numbers = #tpu.dot_dimension_numbers<[1], [0], [0], [1], [0, 0, 1, 1], [], []>} : vector<4x8xbf16>, vector<8x64xbf16>, vector<4x64xf32> -> vector<4x64xf32>
    %62 = arith.truncf %61 : vector<4x64xf32> to vector<4x64xbf16>
    %c0_56 = arith.constant 0 : index
    %c0_57 = arith.constant 0 : index
    %c0_58 = arith.constant 0 : index
    %63 = vector.load %arg9[%c0_56, %c0_57, %c0_58] : memref<3x64x64xbf16, #tpu.memory_space<vmem>>, vector<1x64x64xbf16>
    %64 = vector.shape_cast %63 : vector<1x64x64xbf16> to vector<64x64xbf16>
    %cst_59 = arith.constant dense<0.000000e+00> : vector<4x64xf32>
    %65 = tpu.matmul %62, %64, %cst_59 {dimension_numbers = #tpu.dot_dimension_numbers<[1], [0], [0], [1], [0, 0, 1, 1], [], []>} : vector<4x64xbf16>, vector<64x64xbf16>, vector<4x64xf32> -> vector<4x64xf32>
    %c1_60 = arith.constant 1 : index
    %c0_61 = arith.constant 0 : index
    %c0_62 = arith.constant 0 : index
    %66 = vector.load %arg8[%c1_60, %c0_61, %c0_62] : memref<3x4x8xbf16, #tpu.memory_space<vmem>>, vector<1x4x8xbf16>
    %67 = vector.shape_cast %66 : vector<1x4x8xbf16> to vector<4x8xbf16>
    %cst_63 = arith.constant dense<0.000000e+00> : vector<4x64xf32>
    %68 = tpu.matmul %67, %58, %cst_63 {dimension_numbers = #tpu.dot_dimension_numbers<[1], [0], [0], [1], [0, 0, 1, 1], [], []>} : vector<4x8xbf16>, vector<8x64xbf16>, vector<4x64xf32> -> vector<4x64xf32>
    %69 = arith.truncf %68 : vector<4x64xf32> to vector<4x64xbf16>
    %c1_64 = arith.constant 1 : index
    %c0_65 = arith.constant 0 : index
    %c0_66 = arith.constant 0 : index
    %70 = vector.load %arg9[%c1_64, %c0_65, %c0_66] : memref<3x64x64xbf16, #tpu.memory_space<vmem>>, vector<1x64x64xbf16>
    %71 = vector.shape_cast %70 : vector<1x64x64xbf16> to vector<64x64xbf16>
    %cst_67 = arith.constant dense<0.000000e+00> : vector<4x64xf32>
    %72 = tpu.matmul %69, %71, %cst_67 {dimension_numbers = #tpu.dot_dimension_numbers<[1], [0], [0], [1], [0, 0, 1, 1], [], []>} : vector<4x64xbf16>, vector<64x64xbf16>, vector<4x64xf32> -> vector<4x64xf32>
    %73 = arith.addf %65, %72 : vector<4x64xf32>
    %c2_68 = arith.constant 2 : index
    %c0_69 = arith.constant 0 : index
    %c0_70 = arith.constant 0 : index
    %74 = vector.load %arg8[%c2_68, %c0_69, %c0_70] : memref<3x4x8xbf16, #tpu.memory_space<vmem>>, vector<1x4x8xbf16>
    %75 = vector.shape_cast %74 : vector<1x4x8xbf16> to vector<4x8xbf16>
    %cst_71 = arith.constant dense<0.000000e+00> : vector<4x64xf32>
    %76 = tpu.matmul %75, %58, %cst_71 {dimension_numbers = #tpu.dot_dimension_numbers<[1], [0], [0], [1], [0, 0, 1, 1], [], []>} : vector<4x8xbf16>, vector<8x64xbf16>, vector<4x64xf32> -> vector<4x64xf32>
    %77 = arith.truncf %76 : vector<4x64xf32> to vector<4x64xbf16>
    %c2_72 = arith.constant 2 : index
    %c0_73 = arith.constant 0 : index
    %c0_74 = arith.constant 0 : index
    %78 = vector.load %arg9[%c2_72, %c0_73, %c0_74] : memref<3x64x64xbf16, #tpu.memory_space<vmem>>, vector<1x64x64xbf16>
    %79 = vector.shape_cast %78 : vector<1x64x64xbf16> to vector<64x64xbf16>
    %cst_75 = arith.constant dense<0.000000e+00> : vector<4x64xf32>
    %80 = tpu.matmul %77, %79, %cst_75 {dimension_numbers = #tpu.dot_dimension_numbers<[1], [0], [0], [1], [0, 0, 1, 1], [], []>} : vector<4x64xbf16>, vector<64x64xbf16>, vector<4x64xf32> -> vector<4x64xf32>
    %81 = arith.addf %73, %80 : vector<4x64xf32>
    %c0_76 = arith.constant 0 : index
    %c0_77 = arith.constant 0 : index
    %82 = vector.load %arg10[%c0_76, %c0_77] : memref<1x64xf32, #tpu.memory_space<vmem>>, vector<1x64xf32>
    %83 = vector.broadcast %82 : vector<1x64xf32> to vector<4x64xf32>
    %84 = arith.addf %81, %83 : vector<4x64xf32>
    %cst_78 = arith.constant 0.000000e+00 : f32
    %85 = vector.broadcast %cst_78 : f32 to vector<4x64xf32>
    %86 = arith.maximumf %84, %85 : vector<4x64xf32>
    %c0_79 = arith.constant 0 : index
    %c0_80 = arith.constant 0 : index
    %87 = vector.load %arg11[%c0_79, %c0_80] : memref<4x64xf32, #tpu.memory_space<vmem>>, vector<4x64xf32>
    tpu.vector_store %arg11[%c0_79, %c0_80], %86 {strides = array<i32>} : memref<4x64xf32, #tpu.memory_space<vmem>>, vector<4x64xf32>,
    return
  }
  func.func @transform_0(%arg0: i32) -> (i32, i32) {
    %c0_i32 = arith.constant 0 : i32
    %c0_i32_0 = arith.constant 0 : i32
    %c0_i32_1 = arith.constant 0 : i32
    return %c0_i32, %c0_i32_0 : i32, i32
  }
  func.func @transform_1(%arg0: i32) -> (i32, i32, i32) {
    %c0_i32 = arith.constant 0 : i32
    %c0_i32_0 = arith.constant 0 : i32
    %c0_i32_1 = arith.constant 0 : i32
    %c0_i32_2 = arith.constant 0 : i32
    return %c0_i32, %c0_i32_0, %c0_i32_1 : i32, i32, i32
  }
  func.func @transform_2(%arg0: i32) -> (i32, i32, i32) {
    %c0_i32 = arith.constant 0 : i32
    %c0_i32_0 = arith.constant 0 : i32
    %c0_i32_1 = arith.constant 0 : i32
    %c0_i32_2 = arith.constant 0 : i32
    return %c0_i32, %c0_i32_0, %c0_i32_1 : i32, i32, i32
  }
  func.func @transform_3(%arg0: i32) -> (i32, i32) {
    %c0_i32 = arith.constant 0 : i32
    %c0_i32_0 = arith.constant 0 : i32
    %c0_i32_1 = arith.constant 0 : i32
    return %c0_i32, %c0_i32_0 : i32, i32
  }
  func.func @transform_4(%arg0: i32) -> (i32, i32, i32) {
    %c0_i32 = arith.constant 0 : i32
    %c0_i32_0 = arith.constant 0 : i32
    %c0_i32_1 = arith.constant 0 : i32
    %c0_i32_2 = arith.constant 0 : i32
    return %c0_i32, %c0_i32_0, %c0_i32_1 : i32, i32, i32
  }
  func.func @transform_5(%arg0: i32) -> (i32, i32, i32) {
    %c0_i32 = arith.constant 0 : i32
    %c0_i32_0 = arith.constant 0 : i32
    %c0_i32_1 = arith.constant 0 : i32
    %c0_i32_2 = arith.constant 0 : i32
    return %c0_i32, %c0_i32_0, %c0_i32_1 : i32, i32, i32
  }
  func.func @transform_6(%arg0: i32) -> (i32, i32) {
    %c0_i32 = arith.constant 0 : i32
    %c0_i32_0 = arith.constant 0 : i32
    %c0_i32_1 = arith.constant 0 : i32
    return %c0_i32, %c0_i32_0 : i32, i32
  }
  func.func @transform_7(%arg0: i32) -> (i32, i32, i32) {
    %c0_i32 = arith.constant 0 : i32
    %c0_i32_0 = arith.constant 0 : i32
    %c0_i32_1 = arith.constant 0 : i32
    %c0_i32_2 = arith.constant 0 : i32
    return %c0_i32, %c0_i32_0, %c0_i32_1 : i32, i32, i32
  }
  func.func @transform_8(%arg0: i32) -> (i32, i32, i32) {
    %c0_i32 = arith.constant 0 : i32
    %c0_i32_0 = arith.constant 0 : i32
    %c0_i32_1 = arith.constant 0 : i32
    %c0_i32_2 = arith.constant 0 : i32
    return %c0_i32, %c0_i32_0, %c0_i32_1 : i32, i32, i32
  }
  func.func @transform_9(%arg0: i32) -> (i32, i32) {
    %c0_i32 = arith.constant 0 : i32
    %c0_i32_0 = arith.constant 0 : i32
    %c0_i32_1 = arith.constant 0 : i32
    return %c0_i32, %c0_i32_0 : i32, i32
  }
  func.func @transform_10(%arg0: i32) -> (i32, i32) {
    %c0_i32 = arith.constant 0 : i32
    %c0_i32_0 = arith.constant 0 : i32
    %c0_i32_1 = arith.constant 0 : i32
    return %c0_i32, %c0_i32_0 : i32, i32
  }
}

</mosaic_0001>

<bundles_post_ra>
// kernel: backbone_wrapper_forward.1
= control target key start
LH: loop header
LB: loop body
LE: loop exit
PB: predicated region body
PF: predicated region fallthrough
CT: control target
= control target key end

     0   :  { %v1612_v0 = vmov 0.0   ;;  %vm1613_vm0 = vmmov 0   ;;  %vm59_vm1 = vcmask 261120   ;;  %vm199_vm2 = vcmask 523264   ;;  %s1924_s0 = inlined_call_operand.vmem [shape: bf16[32,64], index: 0, kind: input, shape index: {}]   ;;  %s1925_s1 = inlined_call_operand.vmem [shape: bf16[3,16,32], index: 1, kind: input, shape index: {}]   ;;  %s1926_s2 = inlined_call_operand.vmem [shape: bf16[3,64,64], index: 2, kind: input, shape index: {}]   ;;  %s1927_s5 = inlined_call_operand.vmem [shape: bf16[3,64,64], index: 5, kind: input, shape index: {}]   ;;  %s1928_s3 = inlined_call_operand.vmem [shape: f32[1,64], index: 3, kind: input, shape index: {}]   ;;  %s1929_s4 = inlined_call_operand.vmem [shape: bf16[3,8,16], index: 4, kind: input, shape index: {}]   ;;  %s1930_s8 = inlined_call_operand.vmem [shape: bf16[3,64,64], index: 8, kind: input, shape index: {}]   ;;  %s1931_s6 = inlined_call_operand.vmem [shape: f32[1,64], index: 6, kind: input, shape index: {}]   ;;  %s1932_s7 = inlined_call_operand.vmem [shape: bf16[3,4,8], index: 7, kind: input, shape index: {}]   ;;  %s1933_s9 = inlined_call_operand.vmem [shape: f32[1,64], index: 9, kind: input, shape index: {}]   ;;  %s1934_s10 = inlined_call_operand.vmem [shape: f32[4,64], index: 10, kind: output, shape index: {}]  }
   0x1   :  { %1401 = vmatprep.subr.bf16.mxu0 %v1612_v0  ;;  %1409 = vmatprep.subr.bf16.mxu1 %v1612_v0  ;;  %v1571_v1 = vld [vmem:[%s1924_s0] sm:$0xff]   ;;  %v1572_v2 = vld [vmem:[%s1924_s0 + $0x8] sm:$0xff]   ;;  %v1579_v9 = vld [vmem:[%s1926_s2 + $0x30] sm:$0xff]   ;;  %vm457_vm3 = vcmask 130048   ;;  %vm837_vm4 = vcmask 1043456   ;;  %vm833_vm5 = vcmask 64512  }
   0x2   :  { %1405 = vmatprep.mubr.msk.bf16.mxu0 %vm1613_vm0, %v1612_v0  ;;  %1413 = vmatprep.mubr.msk.bf16.mxu1 %vm1613_vm0, %v1612_v0  ;;  %v1573_v3 = vld [vmem:[%s1925_s1] sm:$0xff]   ;;  %v1574_v4 = vld [vmem:[%s1925_s1 + $0x8] sm:$0xff]   ;;  %v1580_v10 = vld [vmem:[%s1926_s2 + $0x10] sm:$0xff]   ;;  %vm1211_vm6 = vcmask 519168  }
   0x3   :  { %1402 = vmatpush3.bf16.msra.mxu0 %v1571_v1  ;;  %1410 = vmatpush3.bf16.msra.mxu1 %v1571_v1  ;;  %v1575_v5 = vld [vmem:[%s1926_s2 + $0x20] sm:$0xff]   ;;  %v1577_v7 = vld [vmem:[%s1926_s2 + $0x28] sm:$0xff]   ;;  %v1581_v11 = vld [vmem:[%s1926_s2 + $0x38] sm:$0xff]  }
   0x4   :  { %1403 = vmatprep.subr.bf16.mxu0 %v1612_v0  ;;  %1411 = vmatprep.subr.bf16.mxu1 %v1612_v0  ;;  %v1576_v6 = vld [vmem:[%s1926_s2] sm:$0xff]   ;;  %v1578_v8 = vld [vmem:[%s1926_s2 + $0x8] sm:$0xff]   ;;  %v1582_v12 = vld [vmem:[%s1926_s2 + $0x18] sm:$0xff]  }
   0x5   :  { %v1584_v23 = vld [vmem:[%s1926_s2 + $0x40] sm:$0xff]   ;;  %v1583_v24 = vld [vmem:[%s1925_s1 + $0x10] sm:$0xff]   ;;  %v1585_v25 = vld [vmem:[%s1926_s2 + $0x48] sm:$0xff]  }
   0x6   :  { %v1586_v26 = vld [vmem:[%s1926_s2 + $0x50] sm:$0xff]   ;;  %v1587_v27 = vld [vmem:[%s1926_s2 + $0x58] sm:$0xff]   ;;  %v1590_v43 = vld [vmem:[%s1927_s5 + $0x20] sm:$0xff]  }
   0x7   :  { %1404 = vmatpush3.bf16.msra.mxu0 %v1572_v2  ;;  %1412 = vmatpush3.bf16.msra.mxu1 %v1572_v2  ;;  %v1592_v44 = vld [vmem:[%s1927_s5 + $0x28] sm:$0xff]   ;;  %v1260_v46 = vld [vmem:[%s1928_s3] ss:$0 sm:$0xff]  ;;  %v1262_v58 = vld [vmem:[%s1929_s4 + $0x4] sm:$0xf] }
   0x8   :  { %1417 = vmatprep.subr.bf16.mxu0 %v1612_v0  ;;  %1429 = vmatprep.subr.bf16.mxu1 %v1612_v0  ;;  %v456_v57 = vld [vmem:[%s1929_s4] sm:$0xf]  ;;  %v1589_v60 = vld [vmem:[%s1927_s5 + $0x8] sm:$0xff]   ;;  %v1591_v61 = vld [vmem:[%s1927_s5 + $0x10] sm:$0xff]  }
   0x9   :  { %v1588_v59 = vld [vmem:[%s1927_s5] sm:$0xff]   ;;  %v1593_v62 = vld [vmem:[%s1927_s5 + $0x18] sm:$0xff]   ;;  %v1594_v63 = vld [vmem:[%s1927_s5 + $0x30] sm:$0xff]  }
   0xa   :  { %1406 = vmatmul.mubr.msk.bf16.vlgmr.msra.gmra.mrb[0].mxu0 %vm59_vm1, %v1573_v3  ;;  %1414 = vmatmul.mubr.msk.bf16.vlgmr.msra.gmra.mrb[0].mxu1 %vm59_vm1, %v1574_v4 }
   0xb   :  { %1418 = vmatpush3.bf16.msra.mxu0 %v1575_v5  ;;  %1430 = vmatpush3.bf16.msra.mxu1 %v1576_v6 }
   0xc   :  { %1419 = vmatprep.subr.bf16.mxu0 %v1612_v0  ;;  %1431 = vmatprep.subr.bf16.mxu1 %v1612_v0 }
   0xd   :  { %1425 = vmatprep.mubr.msk.bf16.mxu0 %vm1613_vm0, %v1612_v0  ;;  %1437 = vmatprep.mubr.msk.bf16.mxu1 %vm1613_vm0, %v1612_v0 }
   0xf   :  { %1420 = vmatpush3.bf16.msra.mxu0 %v1577_v7  ;;  %1432 = vmatpush3.bf16.msra.mxu1 %v1578_v8 }
  0x10   :  { %1421 = vmatprep.subr.bf16.mxu0 %v1612_v0  ;;  %1433 = vmatprep.subr.bf16.mxu1 %v1612_v0 }
  0x13   :  { %1422 = vmatpush3.bf16.msra.mxu0 %v1579_v9  ;;  %1434 = vmatpush3.bf16.msra.mxu1 %v1580_v10 }
  0x14   :  { %1423 = vmatprep.subr.bf16.mxu0 %v1612_v0  ;;  %1435 = vmatprep.subr.bf16.mxu1 %v1612_v0 }
  0x17   :  { %1424 = vmatpush3.bf16.msra.mxu0 %v1581_v11  ;;  %1436 = vmatpush3.bf16.msra.mxu1 %v1582_v12  ;;  %v1282_v12 = vld [vmem:[%s1929_s4 + $0x8] sm:$0xf] }
  0x18   :  { %1441 = vmatprep.subr.bf16.mxu0 %v1612_v0  ;;  %1449 = vmatprep.subr.bf16.mxu1 %v1612_v0 }
  0xdd   :  { %v97_v13 = vpop.f32.mrb[0].mxu0  ;;  %v158_v14 = vpop.f32.mrb[0].mxu1 }
  0xde   :  { %v1407_v15 = vpop.f32.mrb[1].mxu0  ;;  %v1415_v16 = vpop.f32.mrb[1].mxu1 }
  0xdf   :  { %v100_v17 = vpop.f32.mrb[2].mxu0  ;;  %v161_v18 = vpop.f32.mrb[2].mxu1  ;;  %v1598_v15 = vld [vmem:[%s1927_s5 + $0x50] sm:$0xff]   ;;  %v1599_v16 = vld [vmem:[%s1927_s5 + $0x58] sm:$0xff]  }
  0xe0   :  { %v104_v19 = vpack.c.bf16 %v100_v17, %v97_v13  ;;  %v165_v20 = vpack.c.bf16 %v161_v18, %v158_v14  ;;  %v1416_v21 = vpop.f32.mrb[3].mxu1  ;;  %v1408_v22 = vpop.f32.mrb[3].mxu0  ;;  %v1596_v13 = vld [vmem:[%s1927_s5 + $0x40] sm:$0xff]   ;;  %v1597_v14 = vld [vmem:[%s1927_s5 + $0x48] sm:$0xff]  }
  0xe2   :  { %1426 = vmatmul.mubr.msk.bf16.vlgmr.msra.gmra.mrb[4].mxu0 %vm199_vm2, %v165_v20  ;;  %1438 = vmatmul.mubr.msk.bf16.vlgmr.msra.gmra.mrb[4].mxu1 %vm199_vm2, %v104_v19 }
  0xe3   :  { %1442 = vmatpush3.bf16.msra.mxu0 %v1571_v1  ;;  %1445 = vmatprep.mubr.msk.bf16.mxu0 %vm1613_vm0, %v1612_v0  ;;  %v1595_v1 = vld [vmem:[%s1927_s5 + $0x38] sm:$0xff]  }
  0xe4   :  { %1443 = vmatprep.subr.bf16.mxu0 %v1612_v0  ;;  %1450 = vmatpush3.bf16.msra.mxu1 %v1584_v23 }
  0xe5   :  { %1451 = vmatprep.subr.bf16.mxu1 %v1612_v0  ;;  %1457 = vmatprep.mubr.msk.bf16.mxu1 %vm1613_vm0, %v1612_v0 }
  0xe7   :  { %1444 = vmatpush3.bf16.msra.mxu0 %v1572_v2 }
  0xe8   :  { %1461 = vmatprep.subr.bf16.mxu0 %v1612_v0  ;;  %1452 = vmatpush3.bf16.msra.mxu1 %v1585_v25 }
  0xe9   :  { %1453 = vmatprep.subr.bf16.mxu1 %v1612_v0 }
  0xea   :  { %1446 = vmatmul.mubr.msk.bf16.vlgmr.msra.gmra.mrb[8].mxu0 %vm59_vm1, %v1583_v24 }
  0xeb   :  { %1463 = vmatprep.mubr.msk.bf16.mxu0 %vm1613_vm0, %v1612_v0 }
  0xec   :  { %1454 = vmatpush3.bf16.msra.mxu1 %v1586_v26 }
  0xed   :  { %1455 = vmatprep.subr.bf16.mxu1 %v1612_v0 }
  0xf0   :  { %1456 = vmatpush3.bf16.msra.mxu1 %v1587_v27 }
  0xf1   :  { %1473 = vmatprep.subr.bf16.mxu1 %v1612_v0 }
 0x1b5   :  { %v237_v28 = vpop.f32.mrb[4].mxu0  ;;  %v305_v29 = vpop.f32.mrb[4].mxu1 }
 0x1b6   :  { %v306_v30 = vadd.f32 %v305_v29, %v237_v28  ;;  %v1427_v31 = vpop.f32.mrb[5].mxu0  ;;  %v1439_v32 = vpop.f32.mrb[5].mxu1 }
 0x1b7   :  { %v240_v33 = vpop.f32.mrb[6].mxu0  ;;  %v308_v34 = vpop.f32.mrb[6].mxu1  ;;  %v1602_v31 = vld [vmem:[%s1930_s8 + $0x20] sm:$0xff]   ;;  %v1604_v32 = vld [vmem:[%s1930_s8 + $0x28] sm:$0xff]  }
 0x1b8   :  { %v309_v35 = vadd.f32 %v308_v34, %v240_v33  ;;  %v1428_v36 = vpop.f32.mrb[7].mxu0  ;;  %v1440_v37 = vpop.f32.mrb[7].mxu1  ;;  %v1297_v34 = vld [vmem:[%s1931_s6] ss:$0 sm:$0xff] }
 0x1bd   :  { %v357_v38 = vpop.f32.mrb[8].mxu0 }
 0x1be   :  { %v1447_v39 = vpop.f32.mrb[9].mxu0 }
 0x1bf   :  { %v360_v40 = vpop.f32.mrb[10].mxu0 }
 0x1c0   :  { %v364_v41 = vpack.c.bf16 %v360_v40, %v357_v38  ;;  %v1448_v42 = vpop.f32.mrb[11].mxu0 }
 0x1c2   :  { %1458 = vmatmul.mubr.msk.bf16.vlgmr.msra.gmra.mrb[8].mxu1 %vm199_vm2, %v364_v41 }
 0x1c3   :  { %1481 = vmatprep.mubr.msk.bf16.mxu1 %vm1613_vm0, %v1612_v0  ;;  %1474 = vmatpush3.bf16.msra.mxu1 %v1590_v43  ;;  %v832_v43 = vld [vmem:[%s1932_s7] sm:$0x3] }
 0x1c4   :  { %1475 = vmatprep.subr.bf16.mxu1 %v1612_v0 }
 0x1c7   :  { %1476 = vmatpush3.bf16.msra.mxu1 %v1592_v44  ;;  %v1299_v44 = vld [vmem:[%s1932_s7 + $0x2] sm:$0x3] }
 0x1c8   :  { %1477 = vmatprep.subr.bf16.mxu1 %v1612_v0 }
 0x1cb   :  { %1478 = vmatpush3.bf16.msra.mxu1 %v1594_v63  ;;  %v1609_v63 = vld [vmem:[%s1930_s8 + $0x48] sm:$0xff]  }
 0x1cc   :  { %1479 = vmatprep.subr.bf16.mxu1 %v1612_v0 }
 0x1cf   :  { %1480 = vmatpush3.bf16.msra.mxu1 %v1595_v1  ;;  %v1610_v1 = vld [vmem:[%s1930_s8 + $0x50] sm:$0xff]  }
 0x1d0   :  { %1497 = vmatprep.subr.bf16.mxu1 %v1612_v0 }
 0x295   :  { %v435_v45 = vpop.f32.mrb[8].mxu1 }
 0x296   :  { %v442_v47 = vadd.f32 %v435_v45, %v306_v30  ;;  %v1459_v48 = vpop.f32.mrb[9].mxu1  ;;  %v1600_v45 = vld [vmem:[%s1930_s8] sm:$0xff]  }
 0x297   :  { %v438_v49 = vpop.f32.mrb[10].mxu1  ;;  %v1605_v48 = vld [vmem:[%s1930_s8 + $0x18] sm:$0xff]  }
 0x298   :  { %v451_v50 = vadd.f32 %v1260_v46, %v442_v47  ;;  %v443_v51 = vadd.f32 %v438_v49, %v309_v35  ;;  %v1460_v52 = vpop.f32.mrb[11].mxu1  ;;  %v1603_v47 = vld [vmem:[%s1930_s8 + $0x10] sm:$0xff]  }
 0x299   :  { %v1606_v49 = vld [vmem:[%s1930_s8 + $0x30] sm:$0xff]  }
 0x29a   :  { %v452_v53 = vadd.f32 %v1260_v46, %v443_v51  ;;  %v453_v54 = vmax.f32 %v451_v50, 0.0  ;;  %v1601_v46 = vld [vmem:[%s1930_s8 + $0x8] sm:$0xff]   ;;  %v1607_v50 = vld [vmem:[%s1930_s8 + $0x38] sm:$0xff]  }
 0x29c   :  { %v454_v55 = vmax.f32 %v452_v53, 0.0 }
 0x29e   :  { %v455_v56 = vpack.c.bf16 %v454_v55, %v453_v54 }
 0x2a0   :  { %1462 = vmatpush3.bf16.msra.mxu0 %v455_v56 }
 0x2a1   :  { %1467 = vmatprep.subr.bf16.mxu0 %v1612_v0 }
 0x2a3   :  { %1464 = vmatmul.mubr.msk.bf16.vlgmr.msra.gmra.mrb[12].mxu0 %vm457_vm3, %v456_v57 }
 0x2a4   :  { %1468 = vmatpush3.bf16.msra.mxu0 %v455_v56  ;;  %1469 = vmatprep.mubr.msk.bf16.mxu0 %vm1613_vm0, %v1612_v0 }
 0x2a5   :  { %1485 = vmatprep.subr.bf16.mxu0 %v1612_v0 }
 0x2ab   :  { %1470 = vmatmul.mubr.msk.bf16.vlgmr.msra.gmra.mrb[16].mxu0 %vm457_vm3, %v1262_v58 }
 0x2ac   :  { %1486 = vmatpush3.bf16.msra.mxu0 %v1588_v59  ;;  %1493 = vmatprep.mubr.msk.bf16.mxu0 %vm1613_vm0, %v1612_v0 }
 0x2ad   :  { %1487 = vmatprep.subr.bf16.mxu0 %v1612_v0 }
 0x2b0   :  { %1488 = vmatpush3.bf16.msra.mxu0 %v1589_v60 }
 0x2b1   :  { %1489 = vmatprep.subr.bf16.mxu0 %v1612_v0 }
 0x2b4   :  { %1490 = vmatpush3.bf16.msra.mxu0 %v1591_v61  ;;  %v1319_v61 = vld [vmem:[%s1932_s7 + $0x4] sm:$0x3] }
 0x2b5   :  { %1491 = vmatprep.subr.bf16.mxu0 %v1612_v0 }
 0x2b8   :  { %1492 = vmatpush3.bf16.msra.mxu0 %v1593_v62  ;;  %v1608_v62 = vld [vmem:[%s1930_s8 + $0x40] sm:$0xff]  }
 0x2b9   :  { %1503 = vmatprep.subr.bf16.mxu0 %v1612_v0 }
 0x376   :  { %v495_v2 = vpop.f32.mrb[12].mxu0 }
 0x377   :  { %v501_v3 = vpack.c.bf16 %v495_v2, %v495_v2  ;;  %v1465_v4 = vpop.f32.mrb[13].mxu0  ;;  %v1611_v2 = vld [vmem:[%s1930_s8 + $0x58] sm:$0xff]  }
 0x378   :  { %v498_v5 = vpop.f32.mrb[14].mxu0 }
 0x379   :  { %v1466_v6 = vpop.f32.mrb[15].mxu0  ;;  %1494 = vmatmul.mubr.msk.bf16.vlgmr.msra.gmra.mrb[20].mxu0 %vm199_vm2, %v501_v3 }
 0x37a   :  { %1511 = vmatprep.mubr.msk.bf16.mxu0 %vm1613_vm0, %v1612_v0  ;;  %1504 = vmatpush3.bf16.msra.mxu0 %v1596_v13 }
 0x37b   :  { %1505 = vmatprep.subr.bf16.mxu0 %v1612_v0 }
 0x37e   :  { %v549_v7 = vpop.f32.mrb[16].mxu0  ;;  %1506 = vmatpush3.bf16.msra.mxu0 %v1597_v14 }
 0x37f   :  { %v555_v8 = vpack.c.bf16 %v549_v7, %v549_v7  ;;  %v1471_v9 = vpop.f32.mrb[17].mxu0  ;;  %1507 = vmatprep.subr.bf16.mxu0 %v1612_v0 }
 0x380   :  { %v552_v10 = vpop.f32.mrb[18].mxu0 }
 0x381   :  { %v1472_v11 = vpop.f32.mrb[19].mxu0  ;;  %1482 = vmatmul.mubr.msk.bf16.vlgmr.msra.gmra.mrb[12].mxu1 %vm199_vm2, %v555_v8 }
 0x382   :  { %1498 = vmatpush3.bf16.msra.mxu1 %v455_v56  ;;  %1499 = vmatprep.mubr.msk.bf16.mxu1 %vm1613_vm0, %v1612_v0 }
 0x383   :  { %1515 = vmatprep.subr.bf16.mxu1 %v1612_v0  ;;  %1508 = vmatpush3.bf16.msra.mxu0 %v1598_v15 }
 0x384   :  { %1509 = vmatprep.subr.bf16.mxu0 %v1612_v0 }
 0x387   :  { %1510 = vmatpush3.bf16.msra.mxu0 %v1599_v16 }
 0x388   :  { %1527 = vmatprep.subr.bf16.mxu0 %v1612_v0 }
 0x389   :  { %1500 = vmatmul.mubr.msk.bf16.vlgmr.msra.gmra.mrb[16].mxu1 %vm457_vm3, %v1282_v12 }
 0x38a   :  { %1517 = vmatprep.mubr.msk.bf16.mxu1 %vm1613_vm0, %v1612_v0 }
 0x44c   :  { %v693_v17 = vpop.f32.mrb[20].mxu0 }
 0x44d   :  { %v1495_v18 = vpop.f32.mrb[21].mxu0 }
 0x44e   :  { %v696_v19 = vpop.f32.mrb[22].mxu0 }
 0x44f   :  { %v1496_v20 = vpop.f32.mrb[23].mxu0 }
 0x454   :  { %v626_v21 = vpop.f32.mrb[12].mxu1 }
 0x455   :  { %v694_v22 = vadd.f32 %v693_v17, %v626_v21  ;;  %v1483_v23 = vpop.f32.mrb[13].mxu1  ;;  %v1334_v17 = vld [vmem:[%s1933_s9] ss:$0 sm:$0xff] }
 0x456   :  { %v629_v24 = vpop.f32.mrb[14].mxu1 }
 0x457   :  { %v1484_v25 = vpop.f32.mrb[15].mxu1 }
 0x45c   :  { %v738_v26 = vpop.f32.mrb[16].mxu1 }
 0x45d   :  { %v744_v27 = vpack.c.bf16 %v738_v26, %v738_v26  ;;  %v1501_v28 = vpop.f32.mrb[17].mxu1 }
 0x45e   :  { %v741_v29 = vpop.f32.mrb[18].mxu1 }
 0x45f   :  { %v1502_v30 = vpop.f32.mrb[19].mxu1  ;;  %1512 = vmatmul.mubr.msk.bf16.vlgmr.msra.gmra.mrb[24].mxu0 %vm199_vm2, %v744_v27 }
 0x460   :  { %1535 = vmatprep.mubr.msk.bf16.mxu0 %vm1613_vm0, %v1612_v0  ;;  %1528 = vmatpush3.bf16.msra.mxu0 %v1602_v31 }
 0x461   :  { %1529 = vmatprep.subr.bf16.mxu0 %v1612_v0 }
 0x464   :  { %1530 = vmatpush3.bf16.msra.mxu0 %v1604_v32 }
 0x465   :  { %1531 = vmatprep.subr.bf16.mxu0 %v1612_v0 }
 0x468   :  { %1532 = vmatpush3.bf16.msra.mxu0 %v1606_v49 }
 0x469   :  { %1533 = vmatprep.subr.bf16.mxu0 %v1612_v0 }
 0x46c   :  { %1534 = vmatpush3.bf16.msra.mxu0 %v1607_v50 }
 0x46d   :  { %1551 = vmatprep.subr.bf16.mxu0 %v1612_v0 }
 0x532   :  { %v815_v33 = vpop.f32.mrb[24].mxu0 }
 0x533   :  { %v821_v35 = vadd.f32 %v815_v33, %v694_v22  ;;  %v1513_v36 = vpop.f32.mrb[25].mxu0 }
 0x534   :  { %v818_v37 = vpop.f32.mrb[26].mxu0 }
 0x535   :  { %v829_v38 = vadd.f32 %v1297_v34, %v821_v35  ;;  %v1514_v39 = vpop.f32.mrb[27].mxu0 }
 0x537   :  { %v830_v40 = vmax.f32 %v829_v38, 0.0 }
 0x539   :  { %v831_v41 = vpack.c.bf16 %v830_v40, %v830_v40 }
 0x53b   :  { %v839_v42 = vsel %vm837_vm4, %v831_v41, 0 }
 0x53c   :  { %1516 = vmatpush3.bf16.msra.mxu1 %v839_v42 }
 0x53d   :  { %1521 = vmatprep.subr.bf16.mxu1 %v1612_v0 }
 0x53f   :  { %1518 = vmatmul.mubr.msk.bf16.vlgmr.msra.gmra.mrb[20].mxu1 %vm833_vm5, %v832_v43 }
 0x540   :  { %1522 = vmatpush3.bf16.msra.mxu1 %v839_v42  ;;  %1523 = vmatprep.mubr.msk.bf16.mxu1 %vm1613_vm0, %v1612_v0 }
 0x541   :  { %1539 = vmatprep.subr.bf16.mxu1 %v1612_v0 }
 0x547   :  { %1524 = vmatmul.mubr.msk.bf16.vlgmr.msra.gmra.mrb[24].mxu1 %vm833_vm5, %v1299_v44 }
 0x548   :  { %1540 = vmatpush3.bf16.msra.mxu1 %v1600_v45  ;;  %1547 = vmatprep.mubr.msk.bf16.mxu1 %vm1613_vm0, %v1612_v0 }
 0x549   :  { %1541 = vmatprep.subr.bf16.mxu1 %v1612_v0 }
 0x54c   :  { %1542 = vmatpush3.bf16.msra.mxu1 %v1601_v46 }
 0x54d   :  { %1543 = vmatprep.subr.bf16.mxu1 %v1612_v0 }
 0x550   :  { %1544 = vmatpush3.bf16.msra.mxu1 %v1603_v47 }
 0x551   :  { %1545 = vmatprep.subr.bf16.mxu1 %v1612_v0 }
 0x554   :  { %1546 = vmatpush3.bf16.msra.mxu1 %v1605_v48 }
 0x555   :  { %1557 = vmatprep.subr.bf16.mxu1 %v1612_v0 }
 0x612   :  { %v875_v51 = vpop.f32.mrb[20].mxu1 }
 0x613   :  { %v881_v52 = vpack.c.bf16 %v875_v51, %v875_v51  ;;  %v1519_v53 = vpop.f32.mrb[21].mxu1 }
 0x614   :  { %v878_v54 = vpop.f32.mrb[22].mxu1 }
 0x615   :  { %v1520_v55 = vpop.f32.mrb[23].mxu1  ;;  %1548 = vmatmul.mubr.msk.bf16.vlgmr.msra.gmra.mrb[28].mxu1 %vm199_vm2, %v881_v52 }
 0x616   :  { %1565 = vmatprep.mubr.msk.bf16.mxu1 %vm1613_vm0, %v1612_v0  ;;  %1558 = vmatpush3.bf16.msra.mxu1 %v1608_v62 }
 0x617   :  { %1559 = vmatprep.subr.bf16.mxu1 %v1612_v0 }
 0x61a   :  { %v929_v56 = vpop.f32.mrb[24].mxu1  ;;  %1560 = vmatpush3.bf16.msra.mxu1 %v1609_v63 }
 0x61b   :  { %v935_v57 = vpack.c.bf16 %v929_v56, %v929_v56  ;;  %v1525_v58 = vpop.f32.mrb[25].mxu1  ;;  %1561 = vmatprep.subr.bf16.mxu1 %v1612_v0 }
 0x61c   :  { %v932_v59 = vpop.f32.mrb[26].mxu1 }
 0x61d   :  { %1536 = vmatmul.mubr.msk.bf16.vlgmr.msra.gmra.mrb[28].mxu0 %vm199_vm2, %v935_v57  ;;  %v1526_v60 = vpop.f32.mrb[27].mxu1 }
 0x61e   :  { %1552 = vmatpush3.bf16.msra.mxu0 %v839_v42  ;;  %1553 = vmatprep.mubr.msk.bf16.mxu0 %vm1613_vm0, %v1612_v0 }
 0x61f   :  { %1562 = vmatpush3.bf16.msra.mxu1 %v1610_v1 }
 0x620   :  { %1563 = vmatprep.subr.bf16.mxu1 %v1612_v0 }
 0x623   :  { %1564 = vmatpush3.bf16.msra.mxu1 %v1611_v2 }
 0x625   :  { %1554 = vmatmul.mubr.msk.bf16.vlgmr.msra.gmra.mrb[32].mxu0 %vm833_vm5, %v1319_v61 }
 0x6e8   :  { %v1073_v3 = vpop.f32.mrb[28].mxu1 }
 0x6e9   :  { %v1549_v4 = vpop.f32.mrb[29].mxu1 }
 0x6ea   :  { %v1076_v5 = vpop.f32.mrb[30].mxu1 }
 0x6eb   :  { %v1550_v6 = vpop.f32.mrb[31].mxu1 }
 0x6f0   :  { %v1006_v7 = vpop.f32.mrb[28].mxu0 }
 0x6f1   :  { %v1074_v8 = vadd.f32 %v1073_v3, %v1006_v7  ;;  %v1537_v9 = vpop.f32.mrb[29].mxu0 }
 0x6f2   :  { %v1009_v10 = vpop.f32.mrb[30].mxu0 }
 0x6f3   :  { %v1538_v11 = vpop.f32.mrb[31].mxu0 }
 0x6f8   :  { %v1118_v12 = vpop.f32.mrb[32].mxu0 }
 0x6f9   :  { %v1124_v13 = vpack.c.bf16 %v1118_v12, %v1118_v12  ;;  %v1555_v14 = vpop.f32.mrb[33].mxu0 }
 0x6fa   :  { %v1121_v15 = vpop.f32.mrb[34].mxu0 }
 0x6fb   :  { %1566 = vmatmul.mubr.msk.bf16.vlgmr.msra.gmra.mrb[32].mxu1 %vm199_vm2, %v1124_v13  ;;  %v1556_v0 = vpop.f32.mrb[35].mxu0 }
 0x7ce   :  { %v1195_v16 = vpop.f32.mrb[32].mxu1 }
 0x7cf   :  { %v1201_v18 = vadd.f32 %v1195_v16, %v1074_v8  ;;  %v1567_v19 = vpop.f32.mrb[33].mxu1 }
 0x7d0   :  { %v1198_v20 = vpop.f32.mrb[34].mxu1 }
 0x7d1   :  { %v1209_v21 = vadd.f32 %v1334_v17, %v1201_v18  ;;  %v1568_v22 = vpop.f32.mrb[35].mxu1 }
 0x7d3   :  { %v1210_v23 = vmax.f32 %v1209_v21, 0.0 }
 0x7d5   :  { %1212 = vst.msk [vmem:[%s1934_s10] sm:$0xf] %vm1211_vm6, %v1210_v23 }

</bundles_post_ra>
